<compile_context>
chip_gen: v5e
topology: v5e:2x2
jax: 0.10.0
libtpu: 0.0.40
codegen_flags: <defaults>
</compile_context>

<pallas_src>
import math

import jax
import jax.numpy as jnp
from jax.experimental import pallas as pl
from jax.experimental.pallas import tpu as pltpu


def mlp_kernel(x_ref, w1_ref, b1_ref, w2_ref, b2_ref, w3_ref, b3_ref, o_ref):
    # x arrives f32 from HBM; cast to bf16 in-kernel (VPU slack is huge here).
    xb = x_ref[...].astype(jnp.bfloat16)
    # layer 1: bf16 @ bf16 -> f32 accumulate, bias + ReLU in f32
    h1 = jnp.dot(xb, w1_ref[...], preferred_element_type=jnp.float32)
    h1 = jnp.maximum(h1 + b1_ref[...], 0.0)
    # layer 2
    h2 = jnp.dot(h1.astype(jnp.bfloat16), w2_ref[...],
                 preferred_element_type=jnp.float32)
    h2 = jnp.maximum(h2 + b2_ref[...], 0.0)
    # layer 3 (logits, per-sample lane slots, no activation)
    out = jnp.dot(h2.astype(jnp.bfloat16), w3_ref[...],
                  preferred_element_type=jnp.float32)
    o_ref[...] = (out + b3_ref[...]).astype(o_ref.dtype)


def _block_diag(block, p):
    """Block-diagonal replication of a 2-D block, p copies (static small p)."""
    if p == 1:
        return block
    r, c = block.shape
    out = jnp.zeros((p * r, p * c), block.dtype)
    for i in range(p):
        out = out.at[i * r:(i + 1) * r, i * c:(i + 1) * c].set(block)
    return out


def _choose_pack(F, H):
    """Pick how many samples to pack per row so lane dims hit multiples of 128."""
    for p in (8, 4, 2):
        if (p * F) % 128 == 0 and p * F <= 512 and p * H <= 512:
            return p
    return 1


def los_classification_v0(x, params, *, tile_r_max=512):
    """Forward pass of LOS_Classification_V0 as a sample-packed Pallas TPU kernel."""
    w1, b1, w2, b2, w3, b3 = params
    B, F = x.shape
    H = w1.shape[1]
    out_dim = w3.shape[1]

    # ---- sample packing configuration -------------------------------------
    P = _choose_pack(F, H)                        # samples per packed row
    granule = 128 // math.gcd(P, 128)             # per-sample logits slot width
    out_slot = -(-out_dim // granule) * granule   # so P*out_slot % 128 == 0

    # ---- block-diagonal weights / tiled biases (zero padding of the unused
    #      logit lanes cannot contaminate real outputs; off-diagonal blocks
    #      are zero so packed samples stay independent) ----------------------
    w3p = jnp.zeros((H, out_slot), w3.dtype).at[:, :out_dim].set(w3)
    b3p = jnp.zeros((1, out_slot), b3.dtype).at[:, :out_dim].set(
        b3.reshape(1, out_dim))
    w1_bd = _block_diag(w1, P).astype(jnp.bfloat16)      # (P*F, P*H)
    w2_bd = _block_diag(w2, P).astype(jnp.bfloat16)      # (P*H, P*H)
    w3_bd = _block_diag(w3p, P).astype(jnp.bfloat16)     # (P*H, P*out_slot)
    b1_bd = jnp.tile(b1.reshape(1, H), (1, P))           # f32, (1, P*H)
    b2_bd = jnp.tile(b2.reshape(1, H), (1, P))
    b3_bd = jnp.tile(b3p, (1, P))                        # (1, P*out_slot)

    # ---- packed-row count & batch tiling -----------------------------------
    R = -(-B // P)                                 # packed rows needed
    if R <= 16:
        tile_r, n_tiles = R, 1                     # single full-extent tile
    else:
        target = -(-R // 4)                        # ~4 grid steps (v7x: 2 TCs)
        tile_r = min(tile_r_max, max(8, ((target + 7) // 8) * 8))  # mult of 8
        n_tiles = -(-R // tile_r)
    R_pad = n_tiles * tile_r

    xp = x
    pad_rows = R_pad * P - B
    if pad_rows:                                   # only pads when needed
        xp = jnp.pad(xp, ((0, pad_rows), (0, 0)))
    xp = xp.reshape(R_pad, P * F)                  # row-major -> free reshape

    resident = lambda arr: pl.BlockSpec(arr.shape, lambda i: (0, 0))

    out = pl.pallas_call(
        mlp_kernel,
        out_shape=jax.ShapeDtypeStruct((R_pad, P * out_slot), jnp.float32),
        grid=(n_tiles,),
        in_specs=[
            pl.BlockSpec((tile_r, P * F), lambda i: (i, 0)),   # x streamed
            resident(w1_bd), resident(b1_bd),                  # weights resident
            resident(w2_bd), resident(b2_bd),
            resident(w3_bd), resident(b3_bd),
        ],
        out_specs=pl.BlockSpec((tile_r, P * out_slot), lambda i: (i, 0)),
        compiler_params=pltpu.CompilerParams(
            dimension_semantics=("parallel",)),
    )(xp, w1_bd, b1_bd, w2_bd, b2_bd, w3_bd, b3_bd)

    # unpack: (R_pad, P*out_slot) -> (R_pad*P, out_slot) -> (B, out_dim)
    out = out.reshape(R_pad * P, out_slot)
    return out[:B, :out_dim]


def init_params(key, in_put, hidden_units, out_put):
    """Deterministic init mimicking nn.Linear's uniform(-1/sqrt(fan_in), 1/sqrt(fan_in))."""
    ks = jax.random.split(key, 6)

    def linear(kw, kb, fan_in, fan_out):
        bound = 1.0 / jnp.sqrt(jnp.float32(fan_in))
        # Stored as (fan_in, fan_out), i.e. transposed vs PyTorch's (out, in).
        w = jax.random.uniform(kw, (fan_in, fan_out), jnp.float32, -bound, bound)
        b = jax.random.uniform(kb, (1, fan_out), jnp.float32, -bound, bound)
        return w, b

    w1, b1 = linear(ks[0], ks[1], in_put, hidden_units)
    w2, b2 = linear(ks[2], ks[3], hidden_units, hidden_units)
    w3, b3 = linear(ks[4], ks[5], hidden_units, out_put)
    return (w1, b1, w2, b2, w3, b3)


def _reference(x, params):
    # Pure-JAX reference with the SAME bf16 operand rounding as the kernel
    # (f32 accumulation), so the comparison is tight.
    w1, b1, w2, b2, w3, b3 = params
    f = lambda a: a.astype(jnp.bfloat16).astype(jnp.float32)
    h1 = jnp.maximum(f(x) @ f(w1) + b1, 0.0)
    h2 = jnp.maximum(f(h1) @ f(w2) + b2, 0.0)
    return f(h2) @ f(w3) + b3


def _run_case(batch, in_put, hidden_units, out_put, seed):
    key = jax.random.PRNGKey(seed)
    k_x, k_p = jax.random.split(key)
    x = jax.random.normal(k_x, (batch, in_put), jnp.float32)
    params = init_params(k_p, in_put, hidden_units, out_put)

    out = los_classification_v0(x, params)
    jax.block_until_ready(out)

    ref = _reference(x, params)
    assert out.shape == (batch, out_put), out.shape
    max_err = float(jnp.max(jnp.abs(out - ref)))
    assert jnp.allclose(out, ref, atol=1e-4, rtol=1e-4), max_err


if __name__ == "__main__":
    # Small demo shape consistent with the module (in=16, hidden=32, out=5).
    _run_case(batch=8, in_put=16, hidden_units=32, out_put=5, seed=0)
    # Exercise the padded / multi-tile path (batch not a multiple of the pack).
    _run_case(batch=200, in_put=16, hidden_units=32, out_put=5, seed=1)
    print("KERNEL_OK")
</pallas_src>

<mosaic_0001>
module attributes {stable_mosaic.version = 11 : i64} {
  func.func @mlp_kernel(%arg0: i32, %arg1: memref<1x128xf32, #tpu.memory_space<vmem>>, %arg2: memref<128x256xbf16, #tpu.memory_space<vmem>>, %arg3: memref<1x256xf32, #tpu.memory_space<vmem>>, %arg4: memref<256x256xbf16, #tpu.memory_space<vmem>>, %arg5: memref<1x256xf32, #tpu.memory_space<vmem>>, %arg6: memref<256x128xbf16, #tpu.memory_space<vmem>>, %arg7: memref<1x128xf32, #tpu.memory_space<vmem>>, %arg8: memref<1x128xf32, #tpu.memory_space<vmem>>) attributes {dimension_semantics = [#tpu.dimension_semantics<parallel>], iteration_bounds = array<i64: 1>, scalar_prefetch = 0 : i64, scratch_operands = 0 : i64, tpu.core_type = #tpu.core_type<tc>, window_params = [{transform_indices = @transform_0, window_bounds = array<i64: 1, 128>}, {pipeline_mode = #tpu.pipeline_mode<synchronous>, transform_indices = @transform_1, window_bounds = array<i64: 128, 256>}, {pipeline_mode = #tpu.pipeline_mode<synchronous>, transform_indices = @transform_2, window_bounds = array<i64: 1, 256>}, {pipeline_mode = #tpu.pipeline_mode<synchronous>, transform_indices = @transform_3, window_bounds = array<i64: 256, 256>}, {pipeline_mode = #tpu.pipeline_mode<synchronous>, transform_indices = @transform_4, window_bounds = array<i64: 1, 256>}, {pipeline_mode = #tpu.pipeline_mode<synchronous>, transform_indices = @transform_5, window_bounds = array<i64: 256, 128>}, {pipeline_mode = #tpu.pipeline_mode<synchronous>, transform_indices = @transform_6, window_bounds = array<i64: 1, 128>}, {transform_indices = @transform_7, window_bounds = array<i64: 1, 128>}]} {
    %c0 = arith.constant 0 : index
    %c0_0 = arith.constant 0 : index
    %0 = vector.load %arg1[%c0, %c0_0] : memref<1x128xf32, #tpu.memory_space<vmem>>, vector<1x128xf32>
    %1 = arith.truncf %0 : vector<1x128xf32> to vector<1x128xbf16>
    %c0_1 = arith.constant 0 : index
    %c0_2 = arith.constant 0 : index
    %2 = vector.load %arg2[%c0_1, %c0_2] : memref<128x256xbf16, #tpu.memory_space<vmem>>, vector<128x256xbf16>
    %cst = arith.constant dense<0.000000e+00> : vector<1x256xf32>
    %3 = tpu.matmul %1, %2, %cst {dimension_numbers = #tpu.dot_dimension_numbers<[1], [0], [0], [1], [0, 0, 1, 1], [], []>} : vector<1x128xbf16>, vector<128x256xbf16>, vector<1x256xf32> -> vector<1x256xf32>
    %c0_3 = arith.constant 0 : index
    %c0_4 = arith.constant 0 : index
    %4 = vector.load %arg3[%c0_3, %c0_4] : memref<1x256xf32, #tpu.memory_space<vmem>>, vector<1x256xf32>
    %5 = arith.addf %3, %4 : vector<1x256xf32>
    %cst_5 = arith.constant 0.000000e+00 : f32
    %6 = vector.broadcast %cst_5 : f32 to vector<1x256xf32>
    %7 = arith.maximumf %5, %6 : vector<1x256xf32>
    %8 = arith.truncf %7 : vector<1x256xf32> to vector<1x256xbf16>
    %c0_6 = arith.constant 0 : index
    %c0_7 = arith.constant 0 : index
    %9 = vector.load %arg4[%c0_6, %c0_7] : memref<256x256xbf16, #tpu.memory_space<vmem>>, vector<256x256xbf16>
    %cst_8 = arith.constant dense<0.000000e+00> : vector<1x256xf32>
    %10 = tpu.matmul %8, %9, %cst_8 {dimension_numbers = #tpu.dot_dimension_numbers<[1], [0], [0], [1], [0, 0, 1, 1], [], []>} : vector<1x256xbf16>, vector<256x256xbf16>, vector<1x256xf32> -> vector<1x256xf32>
    %c0_9 = arith.constant 0 : index
    %c0_10 = arith.constant 0 : index
    %11 = vector.load %arg5[%c0_9, %c0_10] : memref<1x256xf32, #tpu.memory_space<vmem>>, vector<1x256xf32>
    %12 = arith.addf %10, %11 : vector<1x256xf32>
    %cst_11 = arith.constant 0.000000e+00 : f32
    %13 = vector.broadcast %cst_11 : f32 to vector<1x256xf32>
    %14 = arith.maximumf %12, %13 : vector<1x256xf32>
    %15 = arith.truncf %14 : vector<1x256xf32> to vector<1x256xbf16>
    %c0_12 = arith.constant 0 : index
    %c0_13 = arith.constant 0 : index
    %16 = vector.load %arg6[%c0_12, %c0_13] : memref<256x128xbf16, #tpu.memory_space<vmem>>, vector<256x128xbf16>
    %cst_14 = arith.constant dense<0.000000e+00> : vector<1x128xf32>
    %17 = tpu.matmul %15, %16, %cst_14 {dimension_numbers = #tpu.dot_dimension_numbers<[1], [0], [0], [1], [0, 0, 1, 1], [], []>} : vector<1x256xbf16>, vector<256x128xbf16>, vector<1x128xf32> -> vector<1x128xf32>
    %c0_15 = arith.constant 0 : index
    %c0_16 = arith.constant 0 : index
    %18 = vector.load %arg7[%c0_15, %c0_16] : memref<1x128xf32, #tpu.memory_space<vmem>>, vector<1x128xf32>
    %19 = arith.addf %17, %18 : vector<1x128xf32>
    %c0_17 = arith.constant 0 : index
    %c0_18 = arith.constant 0 : index
    %20 = vector.load %arg8[%c0_17, %c0_18] : memref<1x128xf32, #tpu.memory_space<vmem>>, vector<1x128xf32>
    tpu.vector_store %arg8[%c0_17, %c0_18], %19 {strides = array<i32>} : memref<1x128xf32, #tpu.memory_space<vmem>>, vector<1x128xf32>,
    return
  }
  func.func @transform_0(%arg0: i32) -> (i32, i32) {
    %c0_i32 = arith.constant 0 : i32
    %c0_i32_0 = arith.constant 0 : i32
    return %arg0, %c0_i32 : i32, i32
  }
  func.func @transform_1(%arg0: i32) -> (i32, i32) {
    %c0_i32 = arith.constant 0 : i32
    %c0_i32_0 = arith.constant 0 : i32
    %c0_i32_1 = arith.constant 0 : i32
    return %c0_i32, %c0_i32_0 : i32, i32
  }
  func.func @transform_2(%arg0: i32) -> (i32, i32) {
    %c0_i32 = arith.constant 0 : i32
    %c0_i32_0 = arith.constant 0 : i32
    %c0_i32_1 = arith.constant 0 : i32
    return %c0_i32, %c0_i32_0 : i32, i32
  }
  func.func @transform_3(%arg0: i32) -> (i32, i32) {
    %c0_i32 = arith.constant 0 : i32
    %c0_i32_0 = arith.constant 0 : i32
    %c0_i32_1 = arith.constant 0 : i32
    return %c0_i32, %c0_i32_0 : i32, i32
  }
  func.func @transform_4(%arg0: i32) -> (i32, i32) {
    %c0_i32 = arith.constant 0 : i32
    %c0_i32_0 = arith.constant 0 : i32
    %c0_i32_1 = arith.constant 0 : i32
    return %c0_i32, %c0_i32_0 : i32, i32
  }
  func.func @transform_5(%arg0: i32) -> (i32, i32) {
    %c0_i32 = arith.constant 0 : i32
    %c0_i32_0 = arith.constant 0 : i32
    %c0_i32_1 = arith.constant 0 : i32
    return %c0_i32, %c0_i32_0 : i32, i32
  }
  func.func @transform_6(%arg0: i32) -> (i32, i32) {
    %c0_i32 = arith.constant 0 : i32
    %c0_i32_0 = arith.constant 0 : i32
    %c0_i32_1 = arith.constant 0 : i32
    return %c0_i32, %c0_i32_0 : i32, i32
  }
  func.func @transform_7(%arg0: i32) -> (i32, i32) {
    %c0_i32 = arith.constant 0 : i32
    %c0_i32_0 = arith.constant 0 : i32
    return %arg0, %c0_i32 : i32, i32
  }
}

</mosaic_0001>

<bundles_post_ra>
// kernel: tpu_custom_call.1
= control target key start
LH: loop header
LB: loop body
LE: loop exit
PB: predicated region body
PF: predicated region fallthrough
CT: control target
= control target key end

     0   :  { %12 = vsyncpa [#allocation3], 0  ;;  %s1220_s0 = inlined_call_operand.hbm [shape: f32[1,128], index: 0, kind: input, shape index: {}]   ;;  %s1221_s1 = inlined_call_operand.hbm [shape: bf16[128,256], index: 1, kind: input, shape index: {}]   ;;  %s1222_s2 = inlined_call_operand.hbm [shape: f32[1,256], index: 2, kind: input, shape index: {}]   ;;  %s1223_s3 = inlined_call_operand.hbm [shape: bf16[256,256], index: 3, kind: input, shape index: {}]   ;;  %s1224_s4 = inlined_call_operand.vmem [shape: f32[1,256], index: 4, kind: input, shape index: {}]   ;;  %s1225_s5 = inlined_call_operand.hbm [shape: bf16[256,128], index: 5, kind: input, shape index: {}]   ;;  %s1226_s6 = inlined_call_operand.vmem [shape: f32[1,128], index: 6, kind: input, shape index: {}]   ;;  %s1227_s7 = inlined_call_operand.hbm [shape: f32[1,128], index: 7, kind: output, shape index: {}]  }
   0x1   :  { %13 = vsyncpa [#allocation6], 0 }
   0x2   :  { %14 = vsyncpa [#allocation9], 0  ;;  %s31_s26 = sshll.u32 %s1221_s1, 4  ;;  %s32_s26 = int_to_ptr.hbm [resolvable:$true] %s31_s26 }
   0x3   :  { %15 = vsyncpa [#allocation4], 0  ;;  %s1146_s27 = smov [#allocation5]   ;;  %s55_s8 = sshll.u32 %s1223_s3, 4  ;;  %s56_s8 = int_to_ptr.hbm [resolvable:$true] %s55_s8 }
   0x4   :  { %s33_s28 = sshll.u32 %s1146_s27, 4  ;;  %s1147_s9 = smov 128   ;;  %s34_s28 = int_to_ptr.vmem [resolvable:$true] %s33_s28 }
   0x5   :  { %s1148_s10 = smov 8   ;;  %s1149_s11 = smov [#allocation8]  }
   0x6   :  { %39 = dma.hbm_to_vmem [thread:$0]  %s32_s26, 2048, %s34_s28, [#allocation6], %s1147_s9, %s1147_s9, %s1148_s10  }
   0x7   :  { %s57_s12 = sshll.u32 %s1149_s11, 4  ;;  %s21_s15 = sshll.u32 %s1220_s0, 4  ;;  %s58_s12 = int_to_ptr.vmem [resolvable:$true] %s57_s12  ;;  %s22_s15 = int_to_ptr.hbm [resolvable:$true] %s21_s15 }
   0x8   :  { %63 = dma.hbm_to_vmem [thread:$0]  %s56_s8, 4096, %s58_s12, [#allocation9], %s1147_s9, %s1147_s9, %s1148_s10  }
   0x9   :  { %s45_s17 = sshll.u32 %s1222_s2, 4  ;;  %s1150_s18 = smov [#allocation2]   ;;  %s46_s17 = int_to_ptr.hbm [resolvable:$true] %s45_s17 }
   0xa   :  { %s23_s19 = sshll.u32 %s1150_s18, 4  ;;  %s1151_s3 = smov [#allocation7]   ;;  %s24_s19 = int_to_ptr.vmem [resolvable:$true] %s23_s19 }
   0xb   :  { %26 = dma.hbm_to_vmem [thread:$0]  %s22_s15, 16, %s24_s19, [#allocation3]  }
   0xc   :  { %s47_s20 = sshll.u32 %s1151_s3, 4  ;;  %s70_s23 = sshll.u32 %s1225_s5, 4  ;;  %s48_s20 = int_to_ptr.vmem [resolvable:$true] %s47_s20  ;;  %s71_s23 = int_to_ptr.hbm [resolvable:$true] %s70_s23 }
   0xd   :  { %50 = dma.hbm_to_vmem [thread:$0]  %s46_s17, 32, %s48_s20, [#allocation6]  }
   0xe   :  { %s1152_s0 = smov [#allocation10]   ;;  %s1153_s25 = smov 64  }
   0xf   :  { %s72_s24 = sshll.u32 %s1152_s0, 4  ;;  %s1154_s26 = smov 4   ;;  %s73_s24 = int_to_ptr.vmem [resolvable:$true] %s72_s24 }
  0x10   :  { %78 = dma.hbm_to_vmem [thread:$0]  %s71_s23, 2048, %s73_s24, [#allocation9], %s1153_s25, %s1153_s25, %s1154_s26  }
  0x11   :  { %1138 = dma.done.wait [#allocation3], 16  }
  0x12   :  { %1139 = vsyncadd [#allocation3], 4294967280 }
  0x13   :  { %1140 = dma.done.wait [#allocation6], 2080  }
  0x14   :  { %1141 = vsyncadd [#allocation6], 4294965216 }
  0x15   :  { %1142 = dma.done.wait [#allocation9], 6144  }
  0x16   :  { %1143 = vsyncadd [#allocation9], 4294961152  ;;  %v722_v0 = vld [vmem:[#allocation5 + $0x70] sm:$0xf]  ;;  %v935_v1 = vld [vmem:[#allocation5 + $0x74] sm:$0xf0] }
  0x17   :  { %v934_v2 = vld [vmem:[#allocation5 + $0x74] sm:$0xf]  ;;  %v723_v3 = vor.u32 %v935_v1, %v722_v0  ;;  %v724_v4 = vld [vmem:[#allocation5 + $0x78] sm:$0xf0]  ;;  %v714_v5 = vld [vmem:[#allocation5 + $0x60] sm:$0xf] }
  0x18   :  { %v933_v6 = vld [vmem:[#allocation5 + $0x64] sm:$0xf0]  ;;  %v727_v7 = vor.u32 %v934_v2, %v724_v4  ;;  %v932_v8 = vld [vmem:[#allocation5 + $0x64] sm:$0xf]  ;;  %v716_v9 = vld [vmem:[#allocation5 + $0x68] sm:$0xf0] }
  0x19   :  { %205 = vmatpush.bf16.msra.mxu0 %v723_v3  ;;  %v715_v10 = vor.u32 %v933_v6, %v714_v5  ;;  %v719_v11 = vor.u32 %v932_v8, %v716_v9  ;;  %v706_v12 = vld [vmem:[#allocation5 + $0x50] sm:$0xf]  ;;  %v931_v13 = vld [vmem:[#allocation5 + $0x54] sm:$0xf0]  ;;  %v930_v14 = vld [vmem:[#allocation5 + $0x54] sm:$0xf] }
  0x1a   :  { %218 = vmatpush.bf16.msra.mxu1 %v727_v7  ;;  %v708_v15 = vld [vmem:[#allocation5 + $0x58] sm:$0xf0]  ;;  %v707_v16 = vor.u32 %v931_v13, %v706_v12  ;;  %v698_v18 = vld [vmem:[#allocation5 + $0x40] sm:$0xf]  ;;  %v929_v19 = vld [vmem:[#allocation5 + $0x44] sm:$0xf0] }
  0x1b   :  { %v711_v17 = vor.u32 %v930_v14, %v708_v15  ;;  %v928_v20 = vld [vmem:[#allocation5 + $0x44] sm:$0xf]  ;;  %v700_v21 = vld [vmem:[#allocation5 + $0x48] sm:$0xf0]  ;;  %v699_v22 = vor.u32 %v929_v19, %v698_v18  ;;  %v786_v23 = vld [vmem:[#allocation8 + $0x70] sm:$0xf] }
  0x1c   :  { %v951_v24 = vld [vmem:[#allocation8 + $0x74] sm:$0xf0]  ;;  %v850_v25 = vld [vmem:[#allocation8 + $0xf0] sm:$0xf]  ;;  %v703_v26 = vor.u32 %v928_v20, %v700_v21  ;;  %v778_v34 = vld [vmem:[#allocation8 + $0x60] sm:$0xf] }
  0x1d   :  { %206 = vmatpush.bf16.msra.mxu0 %v715_v10  ;;  %v690_v27 = vld [vmem:[#allocation5 + $0x30] sm:$0xf]  ;;  %v927_v28 = vld [vmem:[#allocation5 + $0x34] sm:$0xf0]  ;;  %v787_v29 = vor.u32 %v951_v24, %v786_v23  ;;  %v926_v31 = vld [vmem:[#allocation5 + $0x34] sm:$0xf] }
  0x1e   :  { %219 = vmatpush.bf16.msra.mxu1 %v719_v11  ;;  %v967_v30 = vld [vmem:[#allocation8 + $0xf4] sm:$0xf0]  ;;  %v949_v35 = vld [vmem:[#allocation8 + $0x64] sm:$0xf0]  ;;  %v842_v36 = vld [vmem:[#allocation8 + $0xe0] sm:$0xf]  ;;  %v691_v38 = vor.u32 %v927_v28, %v690_v27 }
  0x1f   :  { %v692_v32 = vld [vmem:[#allocation5 + $0x38] sm:$0xf0]  ;;  %v851_v33 = vor.u32 %v967_v30, %v850_v25  ;;  %433 = vmatpush.bf16.msra.mxu2 %v787_v29  ;;  %v965_v37 = vld [vmem:[#allocation8 + $0xe4] sm:$0xf0]  ;;  %v682_v39 = vld [vmem:[#allocation5 + $0x20] sm:$0xf]  ;;  %v779_v41 = vor.u32 %v949_v35, %v778_v34 }
  0x20   :  { %v925_v40 = vld [vmem:[#allocation5 + $0x24] sm:$0xf0]  ;;  %v843_v42 = vor.u32 %v965_v37, %v842_v36  ;;  %v695_v43 = vor.u32 %v926_v31, %v692_v32  ;;  %v924_v44 = vld [vmem:[#allocation5 + $0x24] sm:$0xf]  ;;  %v770_v45 = vld [vmem:[#allocation8 + $0x50] sm:$0xf] }
  0x21   :  { %207 = vmatpush.bf16.msra.mxu0 %v707_v16  ;;  %446 = vmatpush.bf16.msra.mxu3 %v851_v33  ;;  %v947_v46 = vld [vmem:[#allocation8 + $0x54] sm:$0xf0]  ;;  %v684_v47 = vld [vmem:[#allocation5 + $0x28] sm:$0xf0]  ;;  %v834_v48 = vld [vmem:[#allocation8 + $0xd0] sm:$0xf]  ;;  %v683_v51 = vor.u32 %v925_v40, %v682_v39 }
  0x22   :  { %220 = vmatpush.bf16.msra.mxu1 %v711_v17  ;;  %v963_v49 = vld [vmem:[#allocation8 + $0xd4] sm:$0xf0]  ;;  %v771_v50 = vor.u32 %v947_v46, %v770_v45  ;;  %v674_v52 = vld [vmem:[#allocation5 + $0x10] sm:$0xf]  ;;  %v762_v54 = vld [vmem:[#allocation8 + $0x40] sm:$0xf]  ;;  %v687_v56 = vor.u32 %v924_v44, %v684_v47 }
  0x23   :  { %434 = vmatpush.bf16.msra.mxu2 %v779_v41  ;;  %v835_v53 = vor.u32 %v963_v49, %v834_v48  ;;  %v945_v55 = vld [vmem:[#allocation8 + $0x44] sm:$0xf0]  ;;  %v923_v57 = vld [vmem:[#allocation5 + $0x14] sm:$0xf0]  ;;  %v826_v58 = vld [vmem:[#allocation8 + $0xc0] sm:$0xf] }
  0x24   :  { %v961_v59 = vld [vmem:[#allocation8 + $0xc4] sm:$0xf0]  ;;  %v922_v60 = vld [vmem:[#allocation5 + $0x14] sm:$0xf]  ;;  %v676_v61 = vld [vmem:[#allocation5 + $0x18] sm:$0xf0]  ;;  %v763_v63 = vor.u32 %v945_v55, %v762_v54  ;;  %v675_v0 = vor.u32 %v923_v57, %v674_v52 }
  0x25   :  { %208 = vmatpush.bf16.msra.mxu0 %v699_v22  ;;  %447 = vmatpush.bf16.msra.mxu3 %v843_v42  ;;  %v666_v62 = vld [vmem:[#allocation5] sm:$0xf]  ;;  %v921_v1 = vld [vmem:[#allocation5 + $0x4] sm:$0xf0]  ;;  %v827_v2 = vor.u32 %v961_v59, %v826_v58  ;;  %v754_v3 = vld [vmem:[#allocation8 + $0x30] sm:$0xf]  ;;  %v679_v5 = vor.u32 %v922_v60, %v676_v61 }
  0x26   :  { %221 = vmatpush.bf16.msra.mxu1 %v703_v26  ;;  %v943_v4 = vld [vmem:[#allocation8 + $0x34] sm:$0xf0]  ;;  %v920_v6 = vld [vmem:[#allocation5 + $0x4] sm:$0xf]  ;;  %v818_v7 = vld [vmem:[#allocation8 + $0xb0] sm:$0xf]  ;;  %v667_v15 = vor.u32 %v921_v1, %v666_v62 }
  0x27   :  { %435 = vmatpush.bf16.msra.mxu2 %v771_v50  ;;  %v959_v8 = vld [vmem:[#allocation8 + $0xb4] sm:$0xf0]  ;;  %v668_v9 = vld [vmem:[#allocation5 + $0x8] sm:$0xf0]  ;;  %v950_v10 = vld [vmem:[#allocation8 + $0x74] sm:$0xf]  ;;  %v755_v14 = vor.u32 %v943_v4, %v754_v3 }
  0x28   :  { %v788_v11 = vld [vmem:[#allocation8 + $0x78] sm:$0xf0]  ;;  %v966_v12 = vld [vmem:[#allocation8 + $0xf4] sm:$0xf]  ;;  %v819_v17 = vor.u32 %v959_v8, %v818_v7  ;;  %v746_v18 = vld [vmem:[#allocation8 + $0x20] sm:$0xf]  ;;  %v671_v20 = vor.u32 %v920_v6, %v668_v9 }
  0x29   :  { %209 = vmatpush.bf16.msra.mxu0 %v691_v38  ;;  %448 = vmatpush.bf16.msra.mxu3 %v835_v53  ;;  %v852_v13 = vld [vmem:[#allocation8 + $0xf8] sm:$0xf0]  ;;  %v941_v19 = vld [vmem:[#allocation8 + $0x24] sm:$0xf0]  ;;  %v791_v21 = vor.u32 %v950_v10, %v788_v11  ;;  %v810_v22 = vld [vmem:[#allocation8 + $0xa0] sm:$0xf] }
  0x2a   :  { %222 = vmatpush.bf16.msra.mxu1 %v695_v43  ;;  %v101_v16 = vld [vmem:[#allocation2] sm:$0x1]  ;;  %v957_v23 = vld [vmem:[#allocation8 + $0xa4] sm:$0xf0]  ;;  %v855_v24 = vor.u32 %v966_v12, %v852_v13  ;;  %v948_v25 = vld [vmem:[#allocation8 + $0x64] sm:$0xf]  ;;  %v747_v30 = vor.u32 %v941_v19, %v746_v18 }
  0x2b   :  { %436 = vmatpush.bf16.msra.mxu2 %v763_v63  ;;  %v780_v26 = vld [vmem:[#allocation8 + $0x68] sm:$0xf0]  ;;  %v102_v27 = vpack.c.bf16 %v101_v16, %v101_v16  ;;  %v964_v28 = vld [vmem:[#allocation8 + $0xe4] sm:$0xf]  ;;  %v811_v31 = vor.u32 %v957_v23, %v810_v22  ;;  %v946_v34 = vld [vmem:[#allocation8 + $0x54] sm:$0xf] }
  0x2c   :  { %v844_v29 = vld [vmem:[#allocation8 + $0xe8] sm:$0xf0]  ;;  %v783_v32 = vor.u32 %v948_v25, %v780_v26  ;;  %v772_v35 = vld [vmem:[#allocation8 + $0x58] sm:$0xf0]  ;;  %v962_v36 = vld [vmem:[#allocation8 + $0xd4] sm:$0xf] }
  0x2d   :  { %210 = vmatpush.bf16.msra.mxu0 %v683_v51  ;;  %449 = vmatpush.bf16.msra.mxu3 %v827_v2  ;;  %v847_v33 = vor.u32 %v964_v28, %v844_v29  ;;  %v836_v37 = vld [vmem:[#allocation8 + $0xd8] sm:$0xf0]  ;;  %v775_v38 = vor.u32 %v946_v34, %v772_v35  ;;  %v944_v40 = vld [vmem:[#allocation8 + $0x44] sm:$0xf]  ;;  %v764_v41 = vld [vmem:[#allocation8 + $0x48] sm:$0xf0] }
  0x2e   :  { %223 = vmatpush.bf16.msra.mxu1 %v687_v56  ;;  %v839_v39 = vor.u32 %v962_v36, %v836_v37  ;;  %v960_v42 = vld [vmem:[#allocation8 + $0xc4] sm:$0xf]  ;;  %v828_v43 = vld [vmem:[#allocation8 + $0xc8] sm:$0xf0]  ;;  %v767_v44 = vor.u32 %v944_v40, %v764_v41  ;;  %v942_v46 = vld [vmem:[#allocation8 + $0x34] sm:$0xf] }
  0x2f   :  { %437 = vmatpush.bf16.msra.mxu2 %v755_v14  ;;  %v831_v45 = vor.u32 %v960_v42, %v828_v43  ;;  %v756_v47 = vld [vmem:[#allocation8 + $0x38] sm:$0xf0]  ;;  %v958_v48 = vld [vmem:[#allocation8 + $0xb4] sm:$0xf]  ;;  %v940_v52 = vld [vmem:[#allocation8 + $0x24] sm:$0xf] }
  0x30   :  { %v820_v49 = vld [vmem:[#allocation8 + $0xb8] sm:$0xf0]  ;;  %v759_v50 = vor.u32 %v942_v46, %v756_v47  ;;  %v748_v53 = vld [vmem:[#allocation8 + $0x28] sm:$0xf0]  ;;  %v956_v54 = vld [vmem:[#allocation8 + $0xa4] sm:$0xf] }
  0x31   :  { %211 = vmatpush.bf16.msra.mxu0 %v675_v0  ;;  %450 = vmatpush.bf16.msra.mxu3 %v819_v17  ;;  %v823_v51 = vor.u32 %v958_v48, %v820_v49  ;;  %v812_v55 = vld [vmem:[#allocation8 + $0xa8] sm:$0xf0]  ;;  %v751_v56 = vor.u32 %v940_v52, %v748_v53  ;;  %v738_v58 = vld [vmem:[#allocation8 + $0x10] sm:$0xf]  ;;  %v939_v59 = vld [vmem:[#allocation8 + $0x14] sm:$0xf0] }
  0x32   :  { %224 = vmatpush.bf16.msra.mxu1 %v679_v5  ;;  %v815_v57 = vor.u32 %v956_v54, %v812_v55  ;;  %v802_v60 = vld [vmem:[#allocation8 + $0x90] sm:$0xf]  ;;  %v739_v61 = vor.u32 %v939_v59, %v738_v58  ;;  %v955_v62 = vld [vmem:[#allocation8 + $0x94] sm:$0xf0]  ;;  %v938_v63 = vld [vmem:[#allocation8 + $0x14] sm:$0xf] }
  0x33   :  { %438 = vmatpush.bf16.msra.mxu2 %v747_v30  ;;  %v740_v0 = vld [vmem:[#allocation8 + $0x18] sm:$0xf0]  ;;  %v803_v1 = vor.u32 %v955_v62, %v802_v60  ;;  %v954_v3 = vld [vmem:[#allocation8 + $0x94] sm:$0xf]  ;;  %v730_v6 = vld [vmem:[#allocation8] sm:$0xf] }
  0x34   :  { %v743_v2 = vor.u32 %v938_v63, %v740_v0  ;;  %v804_v4 = vld [vmem:[#allocation8 + $0x98] sm:$0xf0]  ;;  %v937_v7 = vld [vmem:[#allocation8 + $0x4] sm:$0xf0]  ;;  %v794_v8 = vld [vmem:[#allocation8 + $0x80] sm:$0xf] }
  0x35   :  { %212 = vmatpush.bf16.msra.mxu0 %v667_v15  ;;  %451 = vmatpush.bf16.msra.mxu3 %v811_v31  ;;  %v807_v5 = vor.u32 %v954_v3, %v804_v4  ;;  %v731_v9 = vor.u32 %v937_v7, %v730_v6  ;;  %v953_v10 = vld [vmem:[#allocation8 + $0x84] sm:$0xf0]  ;;  %v936_v11 = vld [vmem:[#allocation8 + $0x4] sm:$0xf]  ;;  %v732_v12 = vld [vmem:[#allocation8 + $0x8] sm:$0xf0] }
  0x36   :  { %225 = vmatpush.bf16.msra.mxu1 %v671_v20  ;;  %v795_v13 = vor.u32 %v953_v10, %v794_v8  ;;  %v735_v14 = vor.u32 %v936_v11, %v732_v12  ;;  %v952_v15 = vld [vmem:[#allocation8 + $0x84] sm:$0xf]  ;;  %v796_v16 = vld [vmem:[#allocation8 + $0x88] sm:$0xf0]  ;;  %v983_v18 = vld [vmem:[#allocation10 + $0x78] sm:$0xff]  ;;  %s1155_s28 = smov [#allocation11]  }
  0x37   :  { %439 = vmatpush.bf16.msra.mxu2 %v739_v61  ;;  %v799_v17 = vor.u32 %v952_v15, %v796_v16  ;;  %v975_v19 = vld [vmem:[#allocation10 + $0x38] sm:$0xff]  ;;  %v982_v20 = vld [vmem:[#allocation10 + $0x70] sm:$0xff]  ;;  %v981_v22 = vld [vmem:[#allocation10 + $0x68] sm:$0xff]  ;;  %s650_s29 = sshll.u32 %s1155_s28, 4  ;;  %s652_s9 = sshll.u32 %s1227_s7, 4  ;;  %s651_s29 = int_to_ptr.vmem [resolvable:$true] %s650_s29  ;;  %s653_s9 = int_to_ptr.hbm [resolvable:$true] %s652_s9 }
  0x38   :  { %213 = vmatmul.bf16.vlgmr.msra.gmra.mxu0 %v102_v27  ;;  %v973_v23 = vld [vmem:[#allocation10 + $0x28] sm:$0xff]  ;;  %v972_v25 = vld [vmem:[#allocation10 + $0x20] sm:$0xff]  ;;  %v979_v26 = vld [vmem:[#allocation10 + $0x58] sm:$0xff] }
  0x39   :  { %459 = vmatpush.bf16.msrb.mxu0 %v791_v21  ;;  %226 = vmatmul.bf16.vlgmr.msra.gmra.mxu1 %v102_v27  ;;  %v974_v21 = vld [vmem:[#allocation10 + $0x30] sm:$0xff]  ;;  %v119_v27 = vld [vmem:[#allocation7] sm:$0x3]  ;;  %v977_v42 = vld [vmem:[#allocation10 + $0x48] sm:$0xff] }
  0x3a   :  { %472 = vmatpush.bf16.msrb.mxu1 %v855_v24  ;;  %452 = vmatpush.bf16.msra.mxu3 %v803_v1  ;;  %v980_v24 = vld [vmem:[#allocation10 + $0x60] sm:$0xff]  ;;  %v978_v28 = vld [vmem:[#allocation10 + $0x50] sm:$0xff]  ;;  %v201_v29 = vperm.slane %v119_v27, 0  ;;  %v202_v30 = vperm.slane %v119_v27, 1  ;;  %v971_v41 = vld [vmem:[#allocation10 + $0x18] sm:$0xff] }
  0x3b   :  { %440 = vmatpush.bf16.msra.mxu2 %v731_v9  ;;  %v970_v43 = vld [vmem:[#allocation10 + $0x10] sm:$0xff]  ;;  %v968_v46 = vld [vmem:[#allocation10] sm:$0xff]  ;;  %v267_v47 = vld [vmem:[%s1224_s4] sm:$0x3] }
  0x3c   :  { %v430_v48 = vperm.slane %v267_v47, 1  ;;  %v429_v53 = vperm.slane %v267_v47, 0  ;;  %v521_v3 = vld [vmem:[%s1226_s6] sm:$0x1] }
  0x3d   :  { %460 = vmatpush.bf16.msrb.mxu0 %v783_v32 }
  0x3e   :  { %473 = vmatpush.bf16.msrb.mxu1 %v847_v33  ;;  %453 = vmatpush.bf16.msra.mxu3 %v795_v13 }
  0x3f   :  { %618 = vmatpush.bf16.msrb.mxu2 %v975_v19 }
  0x41   :  { %461 = vmatpush.bf16.msrb.mxu0 %v775_v38 }
  0x42   :  { %474 = vmatpush.bf16.msrb.mxu1 %v839_v39  ;;  %631 = vmatpush.bf16.msrb.mxu3 %v983_v18 }
  0x43   :  { %619 = vmatpush.bf16.msrb.mxu2 %v974_v21 }
  0x45   :  { %462 = vmatpush.bf16.msrb.mxu0 %v767_v44  ;;  %v976_v44 = vld [vmem:[#allocation10 + $0x40] sm:$0xff] }
  0x46   :  { %475 = vmatpush.bf16.msrb.mxu1 %v831_v45  ;;  %632 = vmatpush.bf16.msrb.mxu3 %v982_v20  ;;  %v969_v45 = vld [vmem:[#allocation10 + $0x8] sm:$0xff] }
  0x47   :  { %620 = vmatpush.bf16.msrb.mxu2 %v973_v23 }
  0x49   :  { %463 = vmatpush.bf16.msrb.mxu0 %v759_v50 }
  0x4a   :  { %476 = vmatpush.bf16.msrb.mxu1 %v823_v51  ;;  %633 = vmatpush.bf16.msrb.mxu3 %v981_v22 }
  0x4b   :  { %621 = vmatpush.bf16.msrb.mxu2 %v972_v25 }
  0x4d   :  { %464 = vmatpush.bf16.msrb.mxu0 %v751_v56 }
  0x4e   :  { %477 = vmatpush.bf16.msrb.mxu1 %v815_v57  ;;  %634 = vmatpush.bf16.msrb.mxu3 %v980_v24 }
  0x4f   :  { %622 = vmatpush.bf16.msrb.mxu2 %v971_v41 }
  0x51   :  { %465 = vmatpush.bf16.msrb.mxu0 %v743_v2 }
  0x52   :  { %478 = vmatpush.bf16.msrb.mxu1 %v807_v5  ;;  %635 = vmatpush.bf16.msrb.mxu3 %v979_v26 }
  0x53   :  { %623 = vmatpush.bf16.msrb.mxu2 %v970_v43 }
  0x55   :  { %466 = vmatpush.bf16.msrb.mxu0 %v735_v14 }
  0x56   :  { %479 = vmatpush.bf16.msrb.mxu1 %v799_v17  ;;  %636 = vmatpush.bf16.msrb.mxu3 %v978_v28 }
  0x57   :  { %624 = vmatpush.bf16.msrb.mxu2 %v969_v45 }
  0x5a   :  { %637 = vmatpush.bf16.msrb.mxu3 %v977_v42 }
  0x5b   :  { %625 = vmatpush.bf16.msrb.mxu2 %v968_v46 }
  0x5e   :  { %638 = vmatpush.bf16.msrb.mxu3 %v976_v44 }
  0xb5   :  { %v214_v31 = vpop.f32.mrf.mxu0 }
  0xb6   :  { %v215_v32 = vadd.f32 %v214_v31, %v201_v29  ;;  %v227_v33 = vpop.f32.mrf.mxu1 }
  0xb7   :  { %v228_v34 = vadd.f32 %v227_v33, %v202_v30 }
  0xb8   :  { %v231_v35 = vmax.f32 %v215_v32, 0.0 }
  0xb9   :  { %v232_v36 = vmax.f32 %v228_v34, 0.0 }
  0xba   :  { %v233_v37 = vpack.c.bf16 %v231_v35, %v231_v35 }
  0xbb   :  { %v234_v38 = vpack.c.bf16 %v232_v36, %v232_v36 }
  0xbc   :  { %441 = vmatmul.bf16.vlgmr.msra.gmra.mxu2 %v233_v37  ;;  %467 = vmatmul.bf16.vlgmr.msrb.gmra.mxu0 %v233_v37 }
  0xbd   :  { %454 = vmatmul.bf16.vlgmr.msra.gmra.mxu3 %v234_v38  ;;  %480 = vmatmul.bf16.vlgmr.msrb.gmra.mxu1 %v234_v38  ;;  %v216_v39 = vpop.f32.mrf.mxu0 }
  0xbe   :  { %v229_v40 = vpop.f32.mrf.mxu1 }
 0x139   :  { %v468_v49 = vpop.f32.mrf.mxu0 }
 0x13a   :  { %v469_v50 = vadd.f32 %v468_v49, %v430_v48  ;;  %v481_v51 = vpop.f32.mrf.mxu1 }
 0x13c   :  { %v482_v52 = vadd.f32 %v481_v51, %v469_v50 }
 0x13e   :  { %v486_v54 = vmax.f32 %v482_v52, 0.0 }
 0x13f   :  { %v442_v55 = vpop.f32.mrf.mxu2 }
 0x140   :  { %v488_v56 = vpack.c.bf16 %v486_v54, %v486_v54  ;;  %v443_v57 = vadd.f32 %v442_v55, %v429_v53  ;;  %v455_v58 = vpop.f32.mrf.mxu3 }
 0x141   :  { %v470_v59 = vpop.f32.mrf.mxu0 }
 0x142   :  { %v456_v60 = vadd.f32 %v455_v58, %v443_v57  ;;  %v483_v61 = vpop.f32.mrf.mxu1  ;;  %639 = vmatmul.bf16.vlgmr.msrb.gmra.mxu3 %v488_v56 }
 0x144   :  { %v485_v62 = vmax.f32 %v456_v60, 0.0 }
 0x146   :  { %v487_v63 = vpack.c.bf16 %v485_v62, %v485_v62 }
 0x147   :  { %v444_v0 = vpop.f32.mrf.mxu2 }
 0x148   :  { %v457_v1 = vpop.f32.mrf.mxu3  ;;  %626 = vmatmul.bf16.vlgmr.msrb.gmra.mxu2 %v487_v63 }
 0x1c5   :  { %v640_v2 = vpop.f32.mrf.mxu3 }
 0x1cb   :  { %v627_v4 = vpop.f32.mrf.mxu2 }
 0x1cc   :  { %v628_v5 = vadd.f32 %v627_v4, %v521_v3 }
 0x1cd   :  { %v642_v6 = vpop.f32.mrf.mxu3 }
 0x1ce   :  { %v641_v7 = vadd.f32 %v640_v2, %v628_v5 }
 0x1d0   :  { %644 = vst [vmem:[#allocation11] sm:$0x1] %v641_v7 }
 0x1d1   :  { %655 = dma.vmem_to_hbm [thread:$0]  %s651_s29, 16, %s653_s9, [#allocation4]  }
 0x1d3   :  { %v629_v8 = vpop.f32.mrf.mxu2 }
 0x1d4   :  { %1144 = dma.done.wait [#allocation4], 16  }
 0x1d5   :  { %1145 = vsyncadd [#allocation4], 4294967280 }
 0x1d6   :  { %660 = vsyncpa [#allocation3], 1 }
 0x1d7   :  { %661 = vsyncpa [#allocation6], 1 }
 0x1d8   :  { %662 = vsyncpa [#allocation9], 1 }
 0x1d9   :  { %663 = vsyncpa [#allocation4], 1 }

</bundles_post_ra>
